<compile_context>
chip_gen: v6e
topology: v6e:2x2x1
jax: 0.10.0
libtpu: 0.0.40
codegen_flags: <defaults>
</compile_context>

<pallas_src>
from functools import partial

import jax
import jax.numpy as jnp
from jax.experimental import pallas as pl
from jax.experimental.pallas import tpu as pltpu

HIDDEN = 256


def _round_up(x: int, m: int) -> int:
    return ((x + m - 1) // m) * m


def _make_actor_kernel(max_action: float):
    def actor_kernel(x_ref, w1_ref, b1_ref, w2_ref, b2_ref, w3_ref, b3_ref, o_ref):
        # Batch-in-lanes layout: x (S, TB) bf16, hidden (256, TB), out (A_pad, TB).
        # All matmuls are W @ x on the MXU with bf16 operands, f32 accumulation.
        x = x_ref[...]                                                    # (S, TB) bf16
        h = jnp.dot(w1_ref[...], x, preferred_element_type=jnp.float32)  # (256, TB)
        h = jnp.maximum(h + b1_ref[...], 0.0)
        h = jnp.dot(w2_ref[...], h.astype(jnp.bfloat16),
                    preferred_element_type=jnp.float32)                  # (256, TB)
        h = jnp.maximum(h + b2_ref[...], 0.0)
        h = jnp.dot(w3_ref[...], h.astype(jnp.bfloat16),
                    preferred_element_type=jnp.float32)                  # (A_pad, TB)
        o_ref[...] = (max_action * jnp.tanh(h + b3_ref[...])).astype(o_ref.dtype)

    return actor_kernel


def prepare_actor_params(params):
    """One-time parameter prep, hoisted out of the per-call path.

    Transposes weights to (out_features, in_features), casts matmul operands to
    bf16, reshapes biases to column vectors (broadcast along the batch/lane dim)
    and zero-pads the action rows up to a sublane multiple of 8 (tanh(0)=0, the
    pad rows are sliced off in actor_forward).
    """
    A = params["w3"].shape[1]
    A_pad = max(8, _round_up(A, 8))
    w3_t = params["w3"].T.astype(jnp.bfloat16)                 # (A, 256)
    b3 = params["b3"].reshape(A, 1).astype(jnp.float32)        # (A, 1)
    if A_pad != A:
        w3_t = jnp.pad(w3_t, ((0, A_pad - A), (0, 0)))
        b3 = jnp.pad(b3, ((0, A_pad - A), (0, 0)))
    return {
        "w1_t": params["w1"].T.astype(jnp.bfloat16),            # (256, S)
        "b1": params["b1"].reshape(HIDDEN, 1).astype(jnp.float32),
        "w2_t": params["w2"].T.astype(jnp.bfloat16),            # (256, 256)
        "b2": params["b2"].reshape(HIDDEN, 1).astype(jnp.float32),
        "w3_t": w3_t,                                            # (A_pad, 256)
        "b3": b3,                                                # (A_pad, 1)
    }


@partial(jax.jit, static_argnames=("action_dim", "max_action", "block_b"))
def actor_forward(state, prep, *, action_dim: int, max_action: float,
                  block_b: int = 1024):
    """state: (B, state_dim) f32. prep: output of prepare_actor_params.

    Returns (B, action_dim) f32 actions.
    """
    B, S = state.shape
    A_pad = prep["w3_t"].shape[0]

    # Batch is the lane dim -> tiles must be multiples of 128.
    block_b = max(128, _round_up(block_b, 128))
    B_lane = _round_up(B, 128)
    tb = min(block_b, B_lane)
    # v7x has 2 TensorCores: keep >=2 balanced "parallel" tiles when possible
    # (no-op on single-TC v5e/v6e).
    if B_lane // tb < 2 and B_lane >= 256:
        tb = _round_up(B_lane // 2, 128)
    B_pad = _round_up(B_lane, tb)

    # Batch-in-lanes input: state^T as bf16 (halves state DMA, no in-kernel cast).
    x_t = state.astype(jnp.bfloat16).T                         # (S, B)
    if B_pad != B:
        x_t = jnp.pad(x_t, ((0, 0), (0, B_pad - B)))           # zero state in pad cols

    w1_t, b1 = prep["w1_t"], prep["b1"]
    w2_t, b2 = prep["w2_t"], prep["b2"]
    w3_t, b3 = prep["w3_t"], prep["b3"]

    # Weights/biases: full block, index_map pinned to block 0 -> DMA'd once and
    # VMEM-resident across all batch tiles.
    def _resident(arr):
        nd = arr.ndim
        return pl.BlockSpec(arr.shape, lambda i, _nd=nd: (0,) * _nd)

    flops = 2 * B_pad * (S * HIDDEN + HIDDEN * HIDDEN + HIDDEN * A_pad)
    bytes_accessed = (
        B_pad * S * 2                      # bf16 state
        + A_pad * B_pad * 4                # f32 output
        + sum(int(a.size) * a.dtype.itemsize
              for a in (w1_t, b1, w2_t, b2, w3_t, b3)))

    out_t = pl.pallas_call(
        _make_actor_kernel(float(max_action)),
        out_shape=jax.ShapeDtypeStruct((A_pad, B_pad), jnp.float32),
        grid=(B_pad // tb,),
        in_specs=[
            pl.BlockSpec((S, tb), lambda i: (0, i)),   # state tile (pipelined)
            _resident(w1_t), _resident(b1),
            _resident(w2_t), _resident(b2),
            _resident(w3_t), _resident(b3),
        ],
        out_specs=pl.BlockSpec((A_pad, tb), lambda i: (0, i)),
        compiler_params=pltpu.CompilerParams(
            # Batch tiles are independent -> shard across TCs on v7x.
            dimension_semantics=("parallel",),
        ),
        cost_estimate=pl.CostEstimate(
            flops=flops,
            transcendentals=B_pad * A_pad,
            bytes_accessed=bytes_accessed,
        ),
    )(x_t, w1_t, b1, w2_t, b2, w3_t, b3)

    # Slice off the padded action rows / batch columns; back to (B, action_dim).
    return out_t[:action_dim, :B].T


def init_actor_params(key, state_dim: int, action_dim: int, hidden: int = HIDDEN):
    """Deterministic synthetic init. Weights stored as (in_features, out_features)."""
    ks = jax.random.split(key, 6)
    s1 = 1.0 / jnp.sqrt(state_dim)
    s2 = 1.0 / jnp.sqrt(hidden)
    return {
        "w1": jax.random.uniform(ks[0], (state_dim, hidden), jnp.float32, -s1, s1),
        "b1": jax.random.uniform(ks[1], (1, hidden), jnp.float32, -s1, s1),
        "w2": jax.random.uniform(ks[2], (hidden, hidden), jnp.float32, -s2, s2),
        "b2": jax.random.uniform(ks[3], (1, hidden), jnp.float32, -s2, s2),
        "w3": jax.random.uniform(ks[4], (hidden, action_dim), jnp.float32, -s2, s2),
        "b3": jax.random.uniform(ks[5], (1, action_dim), jnp.float32, -s2, s2),
    }


def actor_reference(state, params, max_action: float):
    """Pure-JAX f32 reference matching the PyTorch forward."""
    h = jnp.maximum(state @ params["w1"] + params["b1"], 0.0)
    h = jnp.maximum(h @ params["w2"] + params["b2"], 0.0)
    return max_action * jnp.tanh(h @ params["w3"] + params["b3"])


if __name__ == "__main__":
    # Shapes consistent with the RL-TCP env: state_dim=8, action_dim=2, max_action=1.0.
    state_dim, action_dim, max_action = 8, 2, 1.0

    key = jax.random.PRNGKey(0)
    k_params, k_small, k_big = jax.random.split(key, 3)
    params = init_actor_params(k_params, state_dim, action_dim)
    prep = prepare_actor_params(params)   # one-time cast/transpose/pad (hoisted)

    # Tolerance covers bf16 matmul operands (f32 accumulation keeps it tight).
    tol = dict(atol=2e-2, rtol=2e-2)

    # 1) Toy batch (single tile, exercises batch padding 4 -> 128).
    state_small = jax.random.normal(k_small, (4, state_dim), jnp.float32)
    out_small = jax.block_until_ready(
        actor_forward(state_small, prep, action_dim=action_dim, max_action=max_action))
    ref_small = actor_reference(state_small, params, max_action)
    assert out_small.shape == (4, action_dim)
    assert jnp.allclose(out_small, ref_small, **tol), "mismatch vs reference (small batch)"

    # 2) Batched inference (splits into 2 balanced tiles, exercises tile padding).
    state_big = jax.random.normal(k_big, (300, state_dim), jnp.float32)
    out_big = jax.block_until_ready(
        actor_forward(state_big, prep, action_dim=action_dim, max_action=max_action))
    ref_big = actor_reference(state_big, params, max_action)
    assert out_big.shape == (300, action_dim)
    assert jnp.allclose(out_big, ref_big, **tol), "mismatch vs reference (batched)"

    print("KERNEL_OK")
</pallas_src>

<mosaic_0001>
module attributes {stable_mosaic.version = 11 : i64} {
  func.func @actor_kernel(%arg0: i32, %arg1: memref<8x128xbf16, #tpu.memory_space<vmem>>, %arg2: memref<256x8xbf16, #tpu.memory_space<vmem>>, %arg3: memref<256x1xf32, #tpu.memory_space<vmem>>, %arg4: memref<256x256xbf16, #tpu.memory_space<vmem>>, %arg5: memref<256x1xf32, #tpu.memory_space<vmem>>, %arg6: memref<8x256xbf16, #tpu.memory_space<vmem>>, %arg7: memref<8x1xf32, #tpu.memory_space<vmem>>, %arg8: memref<8x128xf32, #tpu.memory_space<vmem>>) attributes {dimension_semantics = [#tpu.dimension_semantics<parallel>], iteration_bounds = array<i64: 1>, scalar_prefetch = 0 : i64, scratch_operands = 0 : i64, tpu.core_type = #tpu.core_type<tc>, window_params = [{transform_indices = @transform_0, window_bounds = array<i64: 8, 128>}, {pipeline_mode = #tpu.pipeline_mode<synchronous>, transform_indices = @transform_1, window_bounds = array<i64: 256, 8>}, {pipeline_mode = #tpu.pipeline_mode<synchronous>, transform_indices = @transform_2, window_bounds = array<i64: 256, 1>}, {pipeline_mode = #tpu.pipeline_mode<synchronous>, transform_indices = @transform_3, window_bounds = array<i64: 256, 256>}, {pipeline_mode = #tpu.pipeline_mode<synchronous>, transform_indices = @transform_4, window_bounds = array<i64: 256, 1>}, {pipeline_mode = #tpu.pipeline_mode<synchronous>, transform_indices = @transform_5, window_bounds = array<i64: 8, 256>}, {pipeline_mode = #tpu.pipeline_mode<synchronous>, transform_indices = @transform_6, window_bounds = array<i64: 8, 1>}, {transform_indices = @transform_7, window_bounds = array<i64: 8, 128>}]} {
    %c0 = arith.constant 0 : index
    %c0_0 = arith.constant 0 : index
    %0 = vector.load %arg1[%c0, %c0_0] : memref<8x128xbf16, #tpu.memory_space<vmem>>, vector<8x128xbf16>
    %c0_1 = arith.constant 0 : index
    %c0_2 = arith.constant 0 : index
    %1 = vector.load %arg2[%c0_1, %c0_2] : memref<256x8xbf16, #tpu.memory_space<vmem>>, vector<256x8xbf16>
    %cst = arith.constant dense<0.000000e+00> : vector<256x128xf32>
    %2 = tpu.matmul %1, %0, %cst {dimension_numbers = #tpu.dot_dimension_numbers<[1], [0], [0], [1], [0, 0, 1, 1], [], []>} : vector<256x8xbf16>, vector<8x128xbf16>, vector<256x128xf32> -> vector<256x128xf32>
    %c0_3 = arith.constant 0 : index
    %c0_4 = arith.constant 0 : index
    %3 = vector.load %arg3[%c0_3, %c0_4] : memref<256x1xf32, #tpu.memory_space<vmem>>, vector<256x1xf32>
    %4 = vector.broadcast %3 : vector<256x1xf32> to vector<256x128xf32>
    %5 = arith.addf %2, %4 : vector<256x128xf32>
    %cst_5 = arith.constant 0.000000e+00 : f32
    %6 = vector.broadcast %cst_5 : f32 to vector<256x128xf32>
    %7 = arith.maximumf %5, %6 : vector<256x128xf32>
    %c0_6 = arith.constant 0 : index
    %c0_7 = arith.constant 0 : index
    %8 = vector.load %arg4[%c0_6, %c0_7] : memref<256x256xbf16, #tpu.memory_space<vmem>>, vector<256x256xbf16>
    %9 = arith.truncf %7 : vector<256x128xf32> to vector<256x128xbf16>
    %cst_8 = arith.constant dense<0.000000e+00> : vector<256x128xf32>
    %10 = tpu.matmul %8, %9, %cst_8 {dimension_numbers = #tpu.dot_dimension_numbers<[1], [0], [0], [1], [0, 0, 1, 1], [], []>} : vector<256x256xbf16>, vector<256x128xbf16>, vector<256x128xf32> -> vector<256x128xf32>
    %c0_9 = arith.constant 0 : index
    %c0_10 = arith.constant 0 : index
    %11 = vector.load %arg5[%c0_9, %c0_10] : memref<256x1xf32, #tpu.memory_space<vmem>>, vector<256x1xf32>
    %12 = vector.broadcast %11 : vector<256x1xf32> to vector<256x128xf32>
    %13 = arith.addf %10, %12 : vector<256x128xf32>
    %cst_11 = arith.constant 0.000000e+00 : f32
    %14 = vector.broadcast %cst_11 : f32 to vector<256x128xf32>
    %15 = arith.maximumf %13, %14 : vector<256x128xf32>
    %c0_12 = arith.constant 0 : index
    %c0_13 = arith.constant 0 : index
    %16 = vector.load %arg6[%c0_12, %c0_13] : memref<8x256xbf16, #tpu.memory_space<vmem>>, vector<8x256xbf16>
    %17 = arith.truncf %15 : vector<256x128xf32> to vector<256x128xbf16>
    %cst_14 = arith.constant dense<0.000000e+00> : vector<8x128xf32>
    %18 = tpu.matmul %16, %17, %cst_14 {dimension_numbers = #tpu.dot_dimension_numbers<[1], [0], [0], [1], [0, 0, 1, 1], [], []>} : vector<8x256xbf16>, vector<256x128xbf16>, vector<8x128xf32> -> vector<8x128xf32>
    %c0_15 = arith.constant 0 : index
    %c0_16 = arith.constant 0 : index
    %19 = vector.load %arg7[%c0_15, %c0_16] : memref<8x1xf32, #tpu.memory_space<vmem>>, vector<8x1xf32>
    %20 = vector.broadcast %19 : vector<8x1xf32> to vector<8x128xf32>
    %21 = arith.addf %18, %20 : vector<8x128xf32>
    %22 = math.tanh %21 : vector<8x128xf32>
    %cst_17 = arith.constant 1.000000e+00 : f32
    %23 = vector.broadcast %cst_17 : f32 to vector<8x128xf32>
    %24 = arith.mulf %23, %22 : vector<8x128xf32>
    %c0_18 = arith.constant 0 : index
    %c0_19 = arith.constant 0 : index
    %25 = vector.load %arg8[%c0_18, %c0_19] : memref<8x128xf32, #tpu.memory_space<vmem>>, vector<8x128xf32>
    tpu.vector_store %arg8[%c0_18, %c0_19], %24 {strides = array<i32>} : memref<8x128xf32, #tpu.memory_space<vmem>>, vector<8x128xf32>,
    return
  }
  func.func @transform_0(%arg0: i32) -> (i32, i32) {
    %c0_i32 = arith.constant 0 : i32
    %c0_i32_0 = arith.constant 0 : i32
    return %c0_i32, %arg0 : i32, i32
  }
  func.func @transform_1(%arg0: i32) -> (i32, i32) {
    %c0_i32 = arith.constant 0 : i32
    %c0_i32_0 = arith.constant 0 : i32
    %c0_i32_1 = arith.constant 0 : i32
    return %c0_i32, %c0_i32_0 : i32, i32
  }
  func.func @transform_2(%arg0: i32) -> (i32, i32) {
    %c0_i32 = arith.constant 0 : i32
    %c0_i32_0 = arith.constant 0 : i32
    %c0_i32_1 = arith.constant 0 : i32
    return %c0_i32, %c0_i32_0 : i32, i32
  }
  func.func @transform_3(%arg0: i32) -> (i32, i32) {
    %c0_i32 = arith.constant 0 : i32
    %c0_i32_0 = arith.constant 0 : i32
    %c0_i32_1 = arith.constant 0 : i32
    return %c0_i32, %c0_i32_0 : i32, i32
  }
  func.func @transform_4(%arg0: i32) -> (i32, i32) {
    %c0_i32 = arith.constant 0 : i32
    %c0_i32_0 = arith.constant 0 : i32
    %c0_i32_1 = arith.constant 0 : i32
    return %c0_i32, %c0_i32_0 : i32, i32
  }
  func.func @transform_5(%arg0: i32) -> (i32, i32) {
    %c0_i32 = arith.constant 0 : i32
    %c0_i32_0 = arith.constant 0 : i32
    %c0_i32_1 = arith.constant 0 : i32
    return %c0_i32, %c0_i32_0 : i32, i32
  }
  func.func @transform_6(%arg0: i32) -> (i32, i32) {
    %c0_i32 = arith.constant 0 : i32
    %c0_i32_0 = arith.constant 0 : i32
    %c0_i32_1 = arith.constant 0 : i32
    return %c0_i32, %c0_i32_0 : i32, i32
  }
  func.func @transform_7(%arg0: i32) -> (i32, i32) {
    %c0_i32 = arith.constant 0 : i32
    %c0_i32_0 = arith.constant 0 : i32
    return %c0_i32, %arg0 : i32, i32
  }
}

</mosaic_0001>

<bundles_post_ra>
// kernel: actor_forward.1
= control target key start
LH: loop header
LB: loop body
LE: loop exit
PB: predicated region body
PF: predicated region fallthrough
CT: control target
= control target key end

     0   :  { %vm381_vm0 = vcmask 1043456   ;;  %v1586_v0 = vmov 0   ;;  %vm332_vm1 = vcmask 64512   ;;  %s2226_s2 = inlined_call_operand.vmem [shape: f32[256,1], index: 2, kind: input, shape index: {}]   ;;  %s2227_s0 = inlined_call_operand.vmem [shape: bf16[8,128], index: 0, kind: input, shape index: {}]   ;;  %s2228_s1 = inlined_call_operand.vmem [shape: bf16[256,8], index: 1, kind: input, shape index: {}]   ;;  %s2229_s4 = inlined_call_operand.vmem [shape: f32[256,1], index: 4, kind: input, shape index: {}]   ;;  %s2230_s6 = inlined_call_operand.vmem [shape: f32[8,1], index: 6, kind: input, shape index: {}]   ;;  %s2231_s3 = inlined_call_operand.vmem [shape: bf16[256,256], index: 3, kind: input, shape index: {}]   ;;  %s2232_s5 = inlined_call_operand.vmem [shape: bf16[8,256], index: 5, kind: input, shape index: {}]   ;;  %s2233_s7 = inlined_call_operand.vmem [shape: f32[8,128], index: 7, kind: output, shape index: {}]  }
   0x1   :  { %1517 = vset.pattern.permute.xlu1 %v1586_v0  ;;  %1516 = vset.pattern.permute.xlu0 %v1586_v0  ;;  %v90_v1 = vld [vmem:[%s2226_s2 + $0xf0] sm:$0xff]  ;;  %v27_v3 = vld [vmem:[%s2227_s0] sm:$0xf]  ;;  %v91_v6 = vld [vmem:[%s2226_s2 + $0xf8] sm:$0xff] }
   0x2   :  { %v74_v2 = vld [vmem:[%s2226_s2 + $0x70] sm:$0xff]  ;;  %244 = vperm.xlu0 %1516, %v90_v1   ;;  %v383_v4 = vsel %vm381_vm0, %v27_v3, 0  ;;  %v1518_v5 = vld [vmem:[%s2228_s1] sm:$0xff]   ;;  %1514 = vmatprep.subr.msk.bf16.mxu0 %vm381_vm0, %v27_v3  ;;  %v75_v7 = vld [vmem:[%s2226_s2 + $0x78] sm:$0xff] }
   0x3   :  { %164 = vperm.xlu1 %1517, %v74_v2   ;;  %1465 = vmatpush3.bf16.msra.mxu0 %v383_v4  ;;  %v1519_v8 = vld [vmem:[%s2228_s1 + $0x8] sm:$0xff]   ;;  %v88_v9 = vld [vmem:[%s2226_s2 + $0xe0] sm:$0xff]  ;;  %v1520_v10 = vld [vmem:[%s2228_s1 + $0x10] sm:$0xff]  }
   0x4   :  { %1466 = vmatprep.mubr.msk.bf16.mxu0 %vm332_vm1, %v1518_v5  ;;  %v89_v11 = vld [vmem:[%s2226_s2 + $0xe8] sm:$0xff]  ;;  %v72_v13 = vld [vmem:[%s2226_s2 + $0x60] sm:$0xff]  ;;  %v1521_v14 = vld [vmem:[%s2228_s1 + $0x18] sm:$0xff]  }
   0x5   :  { %v73_v12 = vld [vmem:[%s2226_s2 + $0x68] sm:$0xff]  ;;  %v1522_v15 = vld [vmem:[%s2228_s1 + $0x20] sm:$0xff]   ;;  %v87_v16 = vld [vmem:[%s2226_s2 + $0xd8] sm:$0xff] }
   0x6   :  { %249 = vperm.xlu0 %1516, %v91_v6   ;;  %1467 = vmatmul.mubr.msk.bf16.vlgmr.msra.gmra.mxu0 %vm332_vm1, %v1519_v8  ;;  %v86_v17 = vld [vmem:[%s2226_s2 + $0xd0] sm:$0xff]  ;;  %v71_v18 = vld [vmem:[%s2226_s2 + $0x58] sm:$0xff]  ;;  %v1523_v20 = vld [vmem:[%s2228_s1 + $0x28] sm:$0xff]  }
   0x7   :  { %169 = vperm.xlu1 %1517, %v75_v7   ;;  %1470 = vmatprep.mubr.msk.bf16.mxu0 %vm332_vm1, %v1520_v10  ;;  %v70_v19 = vld [vmem:[%s2226_s2 + $0x50] sm:$0xff]  ;;  %v85_v22 = vld [vmem:[%s2226_s2 + $0xc8] sm:$0xff]  ;;  %v84_v23 = vld [vmem:[%s2226_s2 + $0xc0] sm:$0xff] }
   0x8   :  { %v1524_v21 = vld [vmem:[%s2228_s1 + $0x30] sm:$0xff]   ;;  %v69_v24 = vld [vmem:[%s2226_s2 + $0x48] sm:$0xff]  ;;  %v68_v25 = vld [vmem:[%s2226_s2 + $0x40] sm:$0xff] }
   0x9   :  { %v1525_v26 = vld [vmem:[%s2228_s1 + $0x38] sm:$0xff]   ;;  %v1526_v27 = vld [vmem:[%s2228_s1 + $0x40] sm:$0xff]   ;;  %v82_v29 = vld [vmem:[%s2226_s2 + $0xb0] sm:$0xff] }
   0xa   :  { %234 = vperm.xlu0 %1516, %v88_v9   ;;  %v83_v28 = vld [vmem:[%s2226_s2 + $0xb8] sm:$0xff]  ;;  %v66_v31 = vld [vmem:[%s2226_s2 + $0x30] sm:$0xff]  ;;  %v1527_v32 = vld [vmem:[%s2228_s1 + $0x48] sm:$0xff]  }
   0xb   :  { %239 = vperm.xlu1 %1517, %v89_v11   ;;  %v67_v30 = vld [vmem:[%s2226_s2 + $0x38] sm:$0xff]  ;;  %v1528_v33 = vld [vmem:[%s2228_s1 + $0x50] sm:$0xff]   ;;  %v81_v34 = vld [vmem:[%s2226_s2 + $0xa8] sm:$0xff] }
   0xc   :  { %v80_v35 = vld [vmem:[%s2226_s2 + $0xa0] sm:$0xff]  ;;  %v65_v36 = vld [vmem:[%s2226_s2 + $0x28] sm:$0xff]  ;;  %v1529_v38 = vld [vmem:[%s2228_s1 + $0x58] sm:$0xff]  }
   0xd   :  { %v64_v37 = vld [vmem:[%s2226_s2 + $0x20] sm:$0xff]  ;;  %v79_v40 = vld [vmem:[%s2226_s2 + $0x98] sm:$0xff]  ;;  %v78_v41 = vld [vmem:[%s2226_s2 + $0x90] sm:$0xff] }
   0xe   :  { %154 = vperm.xlu0 %1516, %v72_v13   ;;  %1471 = vmatmul.mubr.msk.bf16.gmra.mxu0 %vm332_vm1, %v1521_v14  ;;  %v1530_v39 = vld [vmem:[%s2228_s1 + $0x60] sm:$0xff]   ;;  %v63_v42 = vld [vmem:[%s2226_s2 + $0x18] sm:$0xff]  ;;  %v62_v43 = vld [vmem:[%s2226_s2 + $0x10] sm:$0xff] }
   0xf   :  { %159 = vperm.xlu1 %1517, %v73_v12   ;;  %1474 = vmatprep.mubr.msk.bf16.mxu0 %vm332_vm1, %v1522_v15  ;;  %v1531_v44 = vld [vmem:[%s2228_s1 + $0x68] sm:$0xff]   ;;  %v1532_v45 = vld [vmem:[%s2228_s1 + $0x70] sm:$0xff]   ;;  %v76_v47 = vld [vmem:[%s2226_s2 + $0x80] sm:$0xff] }
  0x10   :  { %v77_v46 = vld [vmem:[%s2226_s2 + $0x88] sm:$0xff]  ;;  %v60_v49 = vld [vmem:[%s2226_s2] sm:$0xff]  ;;  %v1533_v50 = vld [vmem:[%s2228_s1 + $0x78] sm:$0xff]  }
  0x11   :  { %v61_v48 = vld [vmem:[%s2226_s2 + $0x8] sm:$0xff]  ;;  %v657_v51 = vld [vmem:[%s2229_s4 + $0xf8] sm:$0xff]  ;;  %v656_v52 = vld [vmem:[%s2229_s4 + $0xf0] sm:$0xff] }
  0x12   :  { %224 = vperm.xlu0 %1516, %v86_v17   ;;  %v641_v53 = vld [vmem:[%s2229_s4 + $0x78] sm:$0xff]  ;;  %v640_v54 = vld [vmem:[%s2229_s4 + $0x70] sm:$0xff]  ;;  %v655_v55 = vld [vmem:[%s2229_s4 + $0xe8] sm:$0xff] }
  0x13   :  { %229 = vperm.xlu1 %1517, %v87_v16   ;;  %v654_v56 = vld [vmem:[%s2229_s4 + $0xe0] sm:$0xff]  ;;  %v639_v57 = vld [vmem:[%s2229_s4 + $0x68] sm:$0xff]  ;;  %v653_v59 = vld [vmem:[%s2229_s4 + $0xd8] sm:$0xff] }
  0x14   :  { %v638_v58 = vld [vmem:[%s2229_s4 + $0x60] sm:$0xff]  ;;  %v652_v60 = vld [vmem:[%s2229_s4 + $0xd0] sm:$0xff]  ;;  %v637_v61 = vld [vmem:[%s2229_s4 + $0x58] sm:$0xff] }
  0x15   :  { %v636_v62 = vld [vmem:[%s2229_s4 + $0x50] sm:$0xff]  ;;  %v651_v63 = vld [vmem:[%s2229_s4 + $0xc8] sm:$0xff]  ;;  %v650_v0 = vld [vmem:[%s2229_s4 + $0xc0] sm:$0xff] }
  0x16   :  { %144 = vperm.xlu0 %1516, %v70_v19   ;;  %1475 = vmatmul.mubr.msk.bf16.gmra.mxu0 %vm332_vm1, %v1523_v20  ;;  %v635_v1 = vld [vmem:[%s2229_s4 + $0x48] sm:$0xff]  ;;  %v634_v2 = vld [vmem:[%s2229_s4 + $0x40] sm:$0xff]  ;;  %v649_v3 = vld [vmem:[%s2229_s4 + $0xb8] sm:$0xff] }
  0x17   :  { %149 = vperm.xlu1 %1517, %v71_v18   ;;  %1478 = vmatprep.mubr.msk.bf16.mxu0 %vm332_vm1, %v1524_v21  ;;  %v648_v4 = vld [vmem:[%s2229_s4 + $0xb0] sm:$0xff]  ;;  %v633_v5 = vld [vmem:[%s2229_s4 + $0x38] sm:$0xff]  ;;  %v647_v7 = vld [vmem:[%s2229_s4 + $0xa8] sm:$0xff] }
  0x18   :  { %v632_v6 = vld [vmem:[%s2229_s4 + $0x30] sm:$0xff]  ;;  %v646_v8 = vld [vmem:[%s2229_s4 + $0xa0] sm:$0xff]  ;;  %v631_v9 = vld [vmem:[%s2229_s4 + $0x28] sm:$0xff] }
  0x19   :  { %v630_v10 = vld [vmem:[%s2229_s4 + $0x20] sm:$0xff]  ;;  %v645_v11 = vld [vmem:[%s2229_s4 + $0x98] sm:$0xff]  ;;  %v644_v12 = vld [vmem:[%s2229_s4 + $0x90] sm:$0xff] }
  0x1a   :  { %214 = vperm.xlu0 %1516, %v84_v23   ;;  %v629_v13 = vld [vmem:[%s2229_s4 + $0x18] sm:$0xff]  ;;  %v628_v14 = vld [vmem:[%s2229_s4 + $0x10] sm:$0xff]  ;;  %v643_v15 = vld [vmem:[%s2229_s4 + $0x88] sm:$0xff] }
  0x1b   :  { %219 = vperm.xlu1 %1517, %v85_v22   ;;  %v642_v16 = vld [vmem:[%s2229_s4 + $0x80] sm:$0xff]  ;;  %v627_v17 = vld [vmem:[%s2229_s4 + $0x8] sm:$0xff] }
  0x1c   :  { %v626_v18 = vld [vmem:[%s2229_s4] sm:$0xff] }
  0x1d   :  { %v1188_v21 = vld [vmem:[%s2230_s6] sm:$0xff] }
  0x1e   :  { %134 = vperm.xlu0 %1516, %v68_v25   ;;  %1479 = vmatmul.mubr.msk.bf16.gmra.mxu0 %vm332_vm1, %v1525_v26 }
  0x1f   :  { %139 = vperm.xlu1 %1517, %v69_v24   ;;  %1482 = vmatprep.mubr.msk.bf16.mxu0 %vm332_vm1, %v1526_v27 }
  0x22   :  { %204 = vperm.xlu0 %1516, %v82_v29  }
  0x23   :  { %209 = vperm.xlu1 %1517, %v83_v28  }
  0x26   :  { %124 = vperm.xlu0 %1516, %v66_v31   ;;  %1483 = vmatmul.mubr.msk.bf16.gmra.mxu0 %vm332_vm1, %v1527_v32 }
  0x27   :  { %129 = vperm.xlu1 %1517, %v67_v30   ;;  %1486 = vmatprep.mubr.msk.bf16.mxu0 %vm332_vm1, %v1528_v33 }
  0x2a   :  { %194 = vperm.xlu0 %1516, %v80_v35  }
  0x2b   :  { %199 = vperm.xlu1 %1517, %v81_v34  }
  0x2e   :  { %114 = vperm.xlu0 %1516, %v64_v37   ;;  %1487 = vmatmul.mubr.msk.bf16.gmra.mxu0 %vm332_vm1, %v1529_v38 }
  0x2f   :  { %119 = vperm.xlu1 %1517, %v65_v36   ;;  %1490 = vmatprep.mubr.msk.bf16.mxu0 %vm332_vm1, %v1530_v39  ;;  %v1536_v39 = vld [vmem:[%s2231_s3 + $0x4] ss:$8 sps:$4 sm:$0xff]  }
  0x32   :  { %184 = vperm.xlu0 %1516, %v78_v41   ;;  %v1539_v41 = vld [vmem:[%s2231_s3 + $0x54] ss:$8 sps:$4 sm:$0xff]  }
  0x33   :  { %189 = vperm.xlu1 %1517, %v79_v40   ;;  %1050 = vmatprep.mubr.bf16.mxu1 %v1539_v41 }
  0x36   :  { %104 = vperm.xlu0 %1516, %v62_v43   ;;  %1491 = vmatmul.mubr.msk.bf16.gmra.mxu0 %vm332_vm1, %v1531_v44 }
  0x37   :  { %109 = vperm.xlu1 %1517, %v63_v42   ;;  %1494 = vmatprep.mubr.msk.bf16.mxu0 %vm332_vm1, %v1532_v45 }
  0x3a   :  { %174 = vperm.xlu0 %1516, %v76_v47  }
  0x3b   :  { %179 = vperm.xlu1 %1517, %v77_v46  }
  0x3e   :  { %94 = vperm.xlu0 %1516, %v60_v49   ;;  %1495 = vmatmul.mubr.msk.bf16.gmra.mxu0 %vm332_vm1, %v1533_v50 }
  0x3f   :  { %99 = vperm.xlu1 %1517, %v61_v48   ;;  %1010 = vmatprep.mubr.bf16.mxu0 %v1536_v39 }
  0x42   :  { %810 = vperm.xlu0 %1516, %v656_v52  }
  0x43   :  { %815 = vperm.xlu1 %1517, %v657_v51  }
  0x46   :  { %730 = vperm.xlu0 %1516, %v640_v54  }
  0x47   :  { %735 = vperm.xlu1 %1517, %v641_v53  }
  0x4a   :  { %800 = vperm.xlu0 %1516, %v654_v56  }
  0x4b   :  { %805 = vperm.xlu1 %1517, %v655_v55  }
  0x4e   :  { %720 = vperm.xlu0 %1516, %v638_v58  }
  0x4f   :  { %725 = vperm.xlu1 %1517, %v639_v57  }
  0x52   :  { %790 = vperm.xlu0 %1516, %v652_v60  }
  0x53   :  { %795 = vperm.xlu1 %1517, %v653_v59  }
  0x56   :  { %710 = vperm.xlu0 %1516, %v636_v62  }
  0x57   :  { %715 = vperm.xlu1 %1517, %v637_v61  }
  0x5a   :  { %780 = vperm.xlu0 %1516, %v650_v0  }
  0x5b   :  { %785 = vperm.xlu1 %1517, %v651_v63  }
  0x5e   :  { %700 = vperm.xlu0 %1516, %v634_v2  }
  0x5f   :  { %705 = vperm.xlu1 %1517, %v635_v1  }
  0x62   :  { %770 = vperm.xlu0 %1516, %v648_v4  }
  0x63   :  { %775 = vperm.xlu1 %1517, %v649_v3  }
  0x66   :  { %690 = vperm.xlu0 %1516, %v632_v6  }
  0x67   :  { %695 = vperm.xlu1 %1517, %v633_v5  }
  0x6a   :  { %760 = vperm.xlu0 %1516, %v646_v8  }
  0x6b   :  { %765 = vperm.xlu1 %1517, %v647_v7  }
  0x6e   :  { %680 = vperm.xlu0 %1516, %v630_v10  }
  0x6f   :  { %685 = vperm.xlu1 %1517, %v631_v9  }
  0x72   :  { %750 = vperm.xlu0 %1516, %v644_v12  }
  0x73   :  { %755 = vperm.xlu1 %1517, %v645_v11  }
  0x76   :  { %670 = vperm.xlu0 %1516, %v628_v14  }
  0x77   :  { %675 = vperm.xlu1 %1517, %v629_v13  }
  0x7a   :  { %740 = vperm.xlu0 %1516, %v642_v16  }
  0x7b   :  { %745 = vperm.xlu1 %1517, %v643_v15  }
  0x7d   :  { %v1886_v19 = vpop.permute.xlu0 %244 }
  0x7e   :  { %v1888_v20 = vpop.permute.xlu1 %164  ;;  %660 = vperm.xlu0 %1516, %v626_v18  }
  0x7f   :  { %665 = vperm.xlu1 %1517, %v627_v17  }
  0x81   :  { %v1893_v22 = vpop.permute.xlu0 %249 }
  0x82   :  { %v1895_v23 = vpop.permute.xlu1 %169  ;;  %1191 = vperm.xlu0 %1516, %v1188_v21  }
  0x85   :  { %v1897_v24 = vpop.permute.xlu0 %234 }
  0x86   :  { %v1899_v25 = vpop.permute.xlu1 %239 }
  0x89   :  { %v1903_v27 = vpop.permute.xlu0 %154 }
  0x8a   :  { %v1901_v26 = vpop.permute.xlu1 %159 }
  0x8d   :  { %v1907_v29 = vpop.permute.xlu0 %224 }
  0x8e   :  { %v1905_v28 = vpop.permute.xlu1 %229 }
  0x91   :  { %v1911_v31 = vpop.permute.xlu0 %144 }
  0x92   :  { %v1909_v30 = vpop.permute.xlu1 %149 }
  0x95   :  { %v1913_v32 = vpop.permute.xlu0 %214 }
  0x96   :  { %v1915_v33 = vpop.permute.xlu1 %219 }
  0x99   :  { %v1917_v34 = vpop.permute.xlu0 %134 }
  0x9a   :  { %v1919_v35 = vpop.permute.xlu1 %139 }
  0x9d   :  { %v1921_v36 = vpop.permute.xlu0 %204 }
  0x9e   :  { %v1923_v37 = vpop.permute.xlu1 %209 }
  0xa1   :  { %v125_v38 = vpop.permute.xlu0 %124 }
  0xa2   :  { %v130_v40 = vpop.permute.xlu1 %129 }
  0xa5   :  { %v1931_v42 = vpop.permute.xlu0 %194 }
  0xa6   :  { %v1933_v43 = vpop.permute.xlu1 %199 }
  0xa9   :  { %v115_v44 = vpop.permute.xlu0 %114 }
  0xaa   :  { %v120_v45 = vpop.permute.xlu1 %119 }
  0xad   :  { %v1935_v46 = vpop.permute.xlu0 %184 }
  0xae   :  { %v1937_v47 = vpop.permute.xlu1 %189 }
  0xb1   :  { %v105_v48 = vpop.permute.xlu0 %104 }
  0xb2   :  { %v110_v49 = vpop.permute.xlu1 %109 }
  0xb5   :  { %v1939_v50 = vpop.permute.xlu0 %174 }
  0xb6   :  { %v1941_v51 = vpop.permute.xlu1 %179 }
  0xb9   :  { %v95_v55 = vpop.permute.xlu0 %94 }
  0xba   :  { %v100_v59 = vpop.permute.xlu1 %99 }
  0xc6   :  { %v1468_v52 = vpop.f32.mrf.mxu0 }
  0xc7   :  { %v428_v54 = vadd.f32 %v1468_v52, %v105_v48 }
  0xc8   :  { %v419_v53 = vpop.f32.mrf.mxu0 }
  0xc9   :  { %v420_v57 = vadd.f32 %v419_v53, %v95_v55  ;;  %v548_v61 = vmax.f32 %v428_v54, 0.0 }
  0xca   :  { %v1469_v56 = vpop.f32.mrf.mxu0 }
  0xcb   :  { %v431_v58 = vadd.f32 %v1469_v56, %v110_v49  ;;  %v546_v1 = vmax.f32 %v420_v57, 0.0 }
  0xcc   :  { %v422_v60 = vpop.f32.mrf.mxu0 }
  0xcd   :  { %v549_v62 = vmax.f32 %v431_v58, 0.0  ;;  %v423_v63 = vadd.f32 %v422_v60, %v100_v59 }
  0xce   :  { %v1472_v0 = vpop.f32.mrf.mxu0 }
  0xcf   :  { %v1943_v2 = vpack.c.bf16 %v549_v62, %v548_v61  ;;  %v547_v3 = vmax.f32 %v423_v63, 0.0  ;;  %v444_v6 = vadd.f32 %v1472_v0, %v125_v38 }
  0xd0   :  { %v435_v4 = vpop.f32.mrf.mxu0 }
  0xd1   :  { %v1945_v5 = vpack.c.bf16 %v547_v3, %v546_v1  ;;  %v436_v8 = vadd.f32 %v435_v4, %v115_v44  ;;  %v552_v11 = vmax.f32 %v444_v6, 0.0 }
  0xd2   :  { %v1473_v7 = vpop.f32.mrf.mxu0 }
  0xd3   :  { %v447_v9 = vadd.f32 %v1473_v7, %v130_v40  ;;  %v550_v15 = vmax.f32 %v436_v8, 0.0 }
  0xd4   :  { %v438_v10 = vpop.f32.mrf.mxu0 }
  0xd5   :  { %v553_v12 = vmax.f32 %v447_v9, 0.0  ;;  %v439_v13 = vadd.f32 %v438_v10, %v120_v45 }
  0xd6   :  { %v1476_v14 = vpop.f32.mrf.mxu0 }
  0xd7   :  { %v1947_v16 = vpack.c.bf16 %v553_v12, %v552_v11  ;;  %v551_v17 = vmax.f32 %v439_v13, 0.0 }
  0xd8   :  { %v1949_v18 = vpop.f32.mrf.mxu0 }
  0xd9   :  { %v1951_v21 = vpack.c.bf16 %v551_v17, %v550_v15 }
  0xda   :  { %v1477_v39 = vpop.f32.mrf.mxu0 }
  0xdc   :  { %v454_v41 = vpop.f32.mrf.mxu0 }
  0xde   :  { %v1480_v48 = vpop.f32.mrf.mxu0 }
  0xdf   :  { %v476_v3 = vadd.f32 %v1480_v48, %v1888_v20 }
  0xe0   :  { %v467_v38 = vpop.f32.mrf.mxu0 }
  0xe1   :  { %v560_v15 = vmax.f32 %v476_v3, 0.0 }
  0xe2   :  { %v1481_v49 = vpop.f32.mrf.mxu0 }
  0xe3   :  { %v479_v63 = vadd.f32 %v1481_v49, %v1895_v23 }
  0xe4   :  { %v470_v44 = vpop.f32.mrf.mxu0 }
  0xe5   :  { %v561_v8 = vmax.f32 %v479_v63, 0.0  ;;  %v471_v9 = vadd.f32 %v470_v44, %v1901_v26 }
  0xe6   :  { %v1953_v40 = vpop.f32.mrf.mxu0 }
  0xe7   :  { %v617_v49 = vpack.c.bf16 %v561_v8, %v560_v15  ;;  %v1550_v8 = vld [vmem:[%s2231_s3 + $0x20] ss:$8 sps:$4 sm:$0xff]   ;;  %v1560_v15 = vld [vmem:[%s2231_s3 + $0x94] ss:$8 sps:$4 sm:$0xff]  }
  0xe8   :  { %v1955_v52 = vpop.f32.mrf.mxu0 }
  0xea   :  { %v1957_v45 = vpop.f32.mrf.mxu0 }
  0xec   :  { %v1959_v53 = vpop.f32.mrf.mxu0 }
  0xee   :  { %v1488_v54 = vpop.f32.mrf.mxu0 }
  0xf0   :  { %v1961_v55 = vpop.f32.mrf.mxu0 }
  0xf2   :  { %v1489_v56 = vpop.f32.mrf.mxu0 }
  0xf4   :  { %v502_v57 = vpop.f32.mrf.mxu0 }
  0xf6   :  { %v1492_v58 = vpop.f32.mrf.mxu0 }
  0xf7   :  { %v524_v20 = vadd.f32 %v1492_v58, %v1907_v29  ;;  %v511_v58 = vadd.f32 %v1489_v56, %v1923_v37 }
  0xf8   :  { %v515_v59 = vpop.f32.mrf.mxu0 }
  0xf9   :  { %v516_v29 = vadd.f32 %v515_v59, %v1913_v32 }
  0xfa   :  { %v1493_v60 = vpop.f32.mrf.mxu0 }
  0xfb   :  { %v527_v11 = vadd.f32 %v1493_v60, %v1905_v28 }
  0xfc   :  { %v518_v61 = vpop.f32.mrf.mxu0 }
  0xfd   :  { %v573_v26 = vmax.f32 %v527_v11, 0.0  ;;  %v519_v44 = vadd.f32 %v518_v61, %v1915_v33  ;;  %v1554_v11 = vld [vmem:[%s2231_s3 + $0x84] ss:$8 sps:$4 sm:$0xff]  }
  0xfe   :  { %v1496_v62 = vpop.f32.mrf.mxu0 }
  0xff   :  { %v540_v1 = vadd.f32 %v1496_v62, %v1886_v19  ;;  %v468_v19 = vadd.f32 %v467_v38, %v1903_v27  ;;  %v559_v62 = vmax.f32 %v471_v9, 0.0  ;;  %v572_v27 = vmax.f32 %v524_v20, 0.0  ;;  %v1551_v9 = vld [vmem:[%s2231_s3 + $0x70] ss:$8 sps:$4 sm:$0xff]  }
 0x100   :  { %v531_v0 = vpop.f32.mrf.mxu0  ;;  %v571_v61 = vmax.f32 %v519_v44, 0.0  ;;  %v1563_v20 = vld [vmem:[%s2231_s3 + $0x90] ss:$8 sps:$4 sm:$0xff]  }
 0x101   :  { %v532_v6 = vadd.f32 %v531_v0, %v1897_v24  ;;  %v576_v12 = vmax.f32 %v540_v1, 0.0  ;;  %v558_v60 = vmax.f32 %v468_v19, 0.0  ;;  %v623_v33 = vpack.c.bf16 %v573_v26, %v572_v27  ;;  %v1562_v19 = vld [vmem:[%s2231_s3 + $0x40] ss:$8 sps:$4 sm:$0xff]   ;;  %v1573_v26 = vld [vmem:[%s2231_s3 + $0xd4] ss:$8 sps:$4 sm:$0xff]  }
 0x102   :  { %v1497_v4 = vpop.f32.mrf.mxu0  ;;  %v570_v0 = vmax.f32 %v516_v29, 0.0  ;;  %v569_v1 = vmax.f32 %v511_v58, 0.0  ;;  %v1575_v44 = vld [vmem:[%s2231_s3 + $0xd0] ss:$8 sps:$4 sm:$0xff]   ;;  %v2091_v29 = vpop.permute.xlu0 %810 }
 0x103   :  { %v543_v7 = vadd.f32 %v1497_v4, %v1893_v22  ;;  %v574_v17 = vmax.f32 %v532_v6, 0.0  ;;  %v463_v22 = vadd.f32 %v1477_v39, %v1909_v30  ;;  %v455_v30 = vadd.f32 %v454_v41, %v1919_v35  ;;  %v1581_v27 = vld [vmem:[%s2231_s3 + $0xf0] ss:$8 sps:$4 sm:$0xff]  }
 0x104   :  { %v534_v10 = vpop.f32.mrf.mxu0  ;;  %v616_v39 = vpack.c.bf16 %v559_v62, %v558_v60  ;;  %v503_v35 = vadd.f32 %v502_v57, %v1933_v43  ;;  %v622_v41 = vpack.c.bf16 %v571_v61, %v570_v0  ;;  %v492_v43 = vadd.f32 %v1953_v40, %v1935_v46  ;;  %v1572_v62 = vld [vmem:[%s2231_s3 + $0xc0] ss:$8 sps:$4 sm:$0xff]   ;;  %v1579_v60 = vld [vmem:[%s2231_s3 + $0xf4] ss:$8 sps:$4 sm:$0xff]  }
 0x105   :  { %v577_v13 = vmax.f32 %v543_v7, 0.0  ;;  %v535_v23 = vadd.f32 %v534_v10, %v1899_v25  ;;  %v460_v25 = vadd.f32 %v1476_v14, %v1911_v31  ;;  %v557_v38 = vmax.f32 %v463_v22, 0.0  ;;  %v1548_v7 = vld [vmem:[%s2231_s3 + $0x74] ss:$8 sps:$4 sm:$0xff]   ;;  %v1569_v22 = vld [vmem:[%s2231_s3 + $0xb0] ss:$8 sps:$4 sm:$0xff]  }
 0x106   :  { %v452_v31 = vadd.f32 %v1949_v18, %v1917_v34  ;;  %v508_v14 = vadd.f32 %v1488_v54, %v1921_v36  ;;  %v555_v59 = vmax.f32 %v455_v30, 0.0  ;;  %v500_v34 = vadd.f32 %v1961_v55, %v1931_v42  ;;  %v1552_v10 = vld [vmem:[%s2231_s3 + $0x34] ss:$8 sps:$4 sm:$0xff]   ;;  %v731_v30 = vpop.permute.xlu0 %730 }
 0x107   :  { %v625_v48 = vpack.c.bf16 %v577_v13, %v576_v12  ;;  %v575_v24 = vmax.f32 %v535_v23, 0.0  ;;  %v556_v63 = vmax.f32 %v460_v25, 0.0  ;;  %v495_v36 = vadd.f32 %v1957_v45, %v1937_v47  ;;  %v1556_v12 = vld [vmem:[%s2231_s3 + $0x30] ss:$8 sps:$4 sm:$0xff]   ;;  %v1557_v13 = vld [vmem:[%s2231_s3 + $0x80] ss:$8 sps:$4 sm:$0xff]  }
 0x108   :  { %v554_v37 = vmax.f32 %v452_v31, 0.0  ;;  %v568_v56 = vmax.f32 %v508_v14, 0.0  ;;  %v567_v3 = vmax.f32 %v503_v35, 0.0  ;;  %v566_v57 = vmax.f32 %v500_v34, 0.0  ;;  %v1558_v23 = vld [vmem:[%s2231_s3 + $0x44] ss:$8 sps:$4 sm:$0xff]  }
 0x109   :  { %v624_v28 = vpack.c.bf16 %v575_v24, %v574_v17  ;;  %1330 = vmatprep.subr.bf16.mxu0 %v625_v48  ;;  %1498 = vmatprep.subr.bf16.mxu1 %v625_v48  ;;  %v615_v32 = vpack.c.bf16 %v557_v38, %v556_v63  ;;  %v565_v4 = vmax.f32 %v495_v36, 0.0  ;;  %v487_v42 = vadd.f32 %v1959_v53, %v1941_v51  ;;  %v1546_v53 = vld [vmem:[%s2231_s3 + $0x24] ss:$8 sps:$4 sm:$0xff]   ;;  %v1566_v48 = vld [vmem:[%s2231_s3 + $0xa0] ss:$8 sps:$4 sm:$0xff]   ;;  %v2093_v38 = vpop.permute.xlu1 %815 }
 0x10a   :  { %1331 = vmatpush3.bf16.msra.mxu0 %v617_v49  ;;  %1506 = vmatpush3.bf16.msra.mxu1 %v617_v49  ;;  %v614_v18 = vpack.c.bf16 %v555_v59, %v554_v37  ;;  %v621_v54 = vpack.c.bf16 %v569_v1, %v568_v56  ;;  %v620_v55 = vpack.c.bf16 %v567_v3, %v566_v57  ;;  %v564_v47 = vmax.f32 %v492_v43, 0.0  ;;  %v1564_v17 = vld [vmem:[%s2231_s3 + $0xa4] ss:$8 sps:$4 sm:$0xff]   ;;  %v1567_v24 = vld [vmem:[%s2231_s3 + $0xb4] ss:$8 sps:$4 sm:$0xff]   ;;  %v2095_v58 = vpop.permute.xlu0 %800 }
 0x10b   :  { %1332 = vmatprep.subr.bf16.mxu0 %v624_v28  ;;  %1499 = vmatprep.subr.bf16.mxu1 %v624_v28  ;;  %v484_v45 = vadd.f32 %v1955_v52, %v1939_v50  ;;  %v563_v46 = vmax.f32 %v487_v42, 0.0  ;;  %v1534_v50 = vld [vmem:[%s2231_s3] ss:$8 sps:$4 sm:$0xff]   ;;  %v1544_v52 = vld [vmem:[%s2231_s3 + $0x10] ss:$8 sps:$4 sm:$0xff]  }
 0x10c   :  { %v619_v6 = vpack.c.bf16 %v565_v4, %v564_v47  ;;  %v1570_v49 = vld [vmem:[%s2231_s3 + $0xc4] ss:$8 sps:$4 sm:$0xff]   ;;  %v1578_v25 = vld [vmem:[%s2231_s3 + $0xe0] ss:$8 sps:$4 sm:$0xff]  }
 0x10d   :  { %v562_v40 = vmax.f32 %v484_v45, 0.0  ;;  %v1576_v28 = vld [vmem:[%s2231_s3 + $0xe4] ss:$8 sps:$4 sm:$0xff]  }
 0x10e   :  { %1333 = vmatpush3.bf16.msra.mxu0 %v616_v39  ;;  %1507 = vmatpush3.bf16.msra.mxu1 %v616_v39  ;;  %v736_v39 = vpop.permute.xlu1 %735  ;;  %v721_v61 = vpop.permute.xlu0 %720  ;;  %v2116_v56 = vld [vmem:[%s2232_s5] sm:$0xff] }
 0x10f   :  { %1334 = vmatprep.subr.bf16.mxu0 %v623_v33  ;;  %1500 = vmatprep.subr.bf16.mxu1 %v623_v33  ;;  %v618_v51 = vpack.c.bf16 %v563_v46, %v562_v40  ;;  %2235 = vst [vmem:[#allocation2_spill] sm:$0xff] %v2116_v56 }
 0x112   :  { %1335 = vmatpush3.bf16.msra.mxu0 %v615_v32  ;;  %1508 = vmatpush3.bf16.msra.mxu1 %v615_v32  ;;  %v2097_v33 = vpop.permute.xlu1 %805  ;;  %v2099_v31 = vpop.permute.xlu0 %790 }
 0x113   :  { %1336 = vmatprep.subr.bf16.mxu0 %v622_v41  ;;  %1501 = vmatprep.subr.bf16.mxu1 %v622_v41 }
 0x116   :  { %1337 = vmatpush3.bf16.msra.mxu0 %v614_v18  ;;  %1509 = vmatpush3.bf16.msra.mxu1 %v614_v18  ;;  %v726_v63 = vpop.permute.xlu1 %725  ;;  %v711_v0 = vpop.permute.xlu0 %710  ;;  %v1312_v18 = vcombine.high %v2116_v56, %v2116_v56 }
 0x117   :  { %1338 = vmatprep.subr.bf16.mxu0 %v621_v54  ;;  %1502 = vmatprep.subr.bf16.mxu1 %v621_v54 }
 0x11a   :  { %1339 = vmatpush3.bf16.msra.mxu0 %v1947_v16  ;;  %1510 = vmatpush3.bf16.msra.mxu1 %v1947_v16  ;;  %v1537_v16 = vld [vmem:[%s2231_s3 + $0x50] ss:$8 sps:$4 sm:$0xff]   ;;  %v2101_v14 = vpop.permute.xlu1 %795  ;;  %v2103_v59 = vpop.permute.xlu0 %780 }
 0x11b   :  { %1340 = vmatprep.subr.bf16.mxu0 %v620_v55  ;;  %1503 = vmatprep.subr.bf16.mxu1 %v620_v55 }
 0x11e   :  { %1341 = vmatpush3.bf16.msra.mxu0 %v1951_v21  ;;  %1511 = vmatpush3.bf16.msra.mxu1 %v1951_v21  ;;  %v1540_v21 = vld [vmem:[%s2231_s3 + $0x14] ss:$8 sps:$4 sm:$0xff]   ;;  %v716_v32 = vpop.permute.xlu1 %715  ;;  %v2107_v35 = vpop.permute.xlu0 %700 }
 0x11f   :  { %1342 = vmatprep.subr.bf16.mxu0 %v619_v6  ;;  %1504 = vmatprep.subr.bf16.mxu1 %v619_v6 }
 0x122   :  { %1343 = vmatpush3.bf16.msra.mxu0 %v1943_v2  ;;  %1512 = vmatpush3.bf16.msra.mxu1 %v1943_v2  ;;  %v1542_v2 = vld [vmem:[%s2231_s3 + $0x64] ss:$8 sps:$4 sm:$0xff]   ;;  %v2105_v1 = vpop.permute.xlu1 %785  ;;  %v2111_v37 = vpop.permute.xlu0 %770 }
 0x123   :  { %1344 = vmatprep.subr.bf16.mxu0 %v618_v51  ;;  %1505 = vmatprep.subr.bf16.mxu1 %v618_v51 }
 0x126   :  { %1345 = vmatpush3.bf16.msra.mxu0 %v1945_v5  ;;  %1513 = vmatpush3.bf16.msra.mxu1 %v1945_v5  ;;  %v1545_v5 = vld [vmem:[%s2231_s3 + $0x60] ss:$8 sps:$4 sm:$0xff]   ;;  %v2109_v41 = vpop.permute.xlu1 %705  ;;  %v2122_v36 = vpop.permute.xlu0 %690 }
 0x129   :  { %1011 = vmatmul.mubr.bf16.vlgmr.msra.gmra.mxu0 %v1534_v50  ;;  %1051 = vmatmul.mubr.bf16.vlgmr.msra.gmra.mxu1 %v1537_v16 }
 0x12a   :  { %1018 = vmatprep.mubr.bf16.mxu0 %v1540_v21  ;;  %1058 = vmatprep.mubr.bf16.mxu1 %v1542_v2  ;;  %v2118_v34 = vpop.permute.xlu1 %775  ;;  %v2126_v42 = vpop.permute.xlu0 %760 }
 0x12b   :  { %2236 = vst [vmem:[#allocation3_spill] sm:$0xff] %v2126_v42 }
 0x12e   :  { %v2124_v3 = vpop.permute.xlu1 %695  ;;  %v2130_v2 = vpop.permute.xlu0 %680 }
 0x12f   :  { %2237 = vst [vmem:[#allocation4_spill] sm:$0xff] %v2130_v2 }
 0x131   :  { %1019 = vmatmul.mubr.bf16.gmra.mxu0 %v1544_v52  ;;  %1059 = vmatmul.mubr.bf16.gmra.mxu1 %v1545_v5 }
 0x132   :  { %1026 = vmatprep.mubr.bf16.mxu0 %v1546_v53  ;;  %1066 = vmatprep.mubr.bf16.mxu1 %v1548_v7  ;;  %v2128_v6 = vpop.permute.xlu1 %765 }
 0x136   :  { %v2134_v53 = vpop.permute.xlu1 %685 }
 0x137   :  { %2239 = vst [vmem:[#allocation6_spill] sm:$0xff] %v2134_v53 }
 0x139   :  { %1027 = vmatmul.mubr.bf16.gmra.mxu0 %v1550_v8  ;;  %1067 = vmatmul.mubr.bf16.gmra.mxu1 %v1551_v9 }
 0x13a   :  { %1034 = vmatprep.mubr.bf16.mxu0 %v1552_v10  ;;  %1074 = vmatprep.mubr.bf16.mxu1 %v1554_v11 }
 0x141   :  { %1035 = vmatmul.mubr.bf16.gmra.mxu0 %v1556_v12  ;;  %1075 = vmatmul.mubr.bf16.gmra.mxu1 %v1557_v13  ;;  %v751_v13 = vpop.permute.xlu0 %750 }
 0x142   :  { %1042 = vmatprep.mubr.bf16.mxu0 %v1558_v23  ;;  %1082 = vmatprep.mubr.bf16.mxu1 %v1560_v15 }
 0x149   :  { %1043 = vmatmul.mubr.bf16.gmra.mxu0 %v1562_v19  ;;  %1083 = vmatmul.mubr.bf16.gmra.mxu1 %v1563_v20 }
 0x14a   :  { %1090 = vmatprep.mubr.bf16.mxu1 %v1564_v17  ;;  %1233 = vmatprep.mubr.bf16.mxu0 %v1312_v18 }
 0x151   :  { %1091 = vmatmul.mubr.bf16.gmra.mxu1 %v1566_v48  ;;  %v756_v48 = vpop.permute.xlu1 %755 }
 0x152   :  { %1098 = vmatprep.mubr.bf16.mxu1 %v1567_v24 }
 0x159   :  { %1099 = vmatmul.mubr.bf16.gmra.mxu1 %v1569_v22 }
 0x15a   :  { %1106 = vmatprep.mubr.bf16.mxu1 %v1570_v49 }
 0x161   :  { %1107 = vmatmul.mubr.bf16.gmra.mxu1 %v1572_v62 }
 0x162   :  { %1114 = vmatprep.mubr.bf16.mxu1 %v1573_v26 }
 0x169   :  { %1115 = vmatmul.mubr.bf16.gmra.mxu1 %v1575_v44 }
 0x16a   :  { %1122 = vmatprep.mubr.bf16.mxu1 %v1576_v28  ;;  %v2144_v28 = vpop.permute.xlu0 %670 }
 0x16b   :  { %2243 = vst [vmem:[#allocation10_spill] sm:$0xff] %v2144_v28 }
 0x171   :  { %1123 = vmatmul.mubr.bf16.gmra.mxu1 %v1578_v25 }
 0x172   :  { %1130 = vmatprep.mubr.bf16.mxu1 %v1579_v60 }
 0x179   :  { %1131 = vmatmul.mubr.bf16.gmra.mxu1 %v1581_v27  ;;  %v2146_v27 = vpop.permute.xlu1 %675 }
 0x17a   :  { %2244 = vst [vmem:[#allocation11_spill] sm:$0xff] %v2146_v27 }
 0x1e9   :  { %v1376_v54 = vpop.f32.mrf.mxu1  ;;  %v2136_v8 = vpop.f32.mrf.mxu0 }
 0x1ea   :  { %2240 = vst [vmem:[#allocation7_spill] sm:$0xff] %v2136_v8 }
 0x1eb   :  { %v1377_v43 = vpop.f32.mrf.mxu1  ;;  %v2138_v15 = vpop.f32.mrf.mxu0 }
 0x1ec   :  { %v1378_v57 = vadd.f32 %v1377_v43, %v1376_v54  ;;  %2241 = vst [vmem:[#allocation8_spill] sm:$0xff] %v2138_v15 }
 0x1ed   :  { %v1379_v4 = vpop.f32.mrf.mxu1  ;;  %v2142_v62 = vpop.f32.mrf.mxu0 }
 0x1ee   :  { %v1053_v47 = vadd.f32 %v1378_v57, %v711_v0  ;;  %2242 = vst [vmem:[#allocation9_spill] sm:$0xff] %v2142_v62  ;;  %v741_v57 = vpop.permute.xlu0 %740 }
 0x1ef   :  { %v1380_v55 = vpop.f32.mrf.mxu1 }
 0x1f0   :  { %v1381_v45 = vadd.f32 %v1380_v55, %v1379_v4  ;;  %v1149_v50 = vmax.f32 %v1053_v47, 0.0 }
 0x1f1   :  { %v1382_v46 = vpop.f32.mrf.mxu1 }
 0x1f2   :  { %v1056_v40 = vadd.f32 %v1381_v45, %v716_v32  ;;  %v746_v45 = vpop.permute.xlu1 %745 }
 0x1f3   :  { %v1383_v51 = vpop.f32.mrf.mxu1 }
 0x1f4   :  { %v1150_v16 = vmax.f32 %v1056_v40, 0.0  ;;  %v1384_v21 = vadd.f32 %v1383_v51, %v1382_v46 }
 0x1f5   :  { %v1385_v52 = vpop.f32.mrf.mxu1 }
 0x1f6   :  { %v2132_v5 = vpack.c.bf16 %v1150_v16, %v1149_v50  ;;  %v1061_v9 = vadd.f32 %v1384_v21, %v721_v61 }
 0x1f7   :  { %v1386_v7 = vpop.f32.mrf.mxu1 }
 0x1f8   :  { %2238 = vst [vmem:[#allocation5_spill] sm:$0xff] %v2132_v5  ;;  %v1387_v10 = vadd.f32 %v1386_v7, %v1385_v52  ;;  %v1151_v19 = vmax.f32 %v1061_v9, 0.0 }
 0x1f9   :  { %v1388_v11 = vpop.f32.mrf.mxu1 }
 0x1fa   :  { %v1064_v12 = vadd.f32 %v1387_v10, %v726_v63  ;;  %v2148_v63 = vpop.f32.mrf.mxu0 }
 0x1fb   :  { %v1389_v23 = vpop.f32.mrf.mxu1  ;;  %2245 = vst [vmem:[#allocation12_spill] sm:$0xff] %v2148_v63 }
 0x1fc   :  { %v1152_v20 = vmax.f32 %v1064_v12, 0.0  ;;  %v1390_v17 = vadd.f32 %v1389_v23, %v1388_v11  ;;  %v2152_v55 = vpop.f32.mrf.mxu0 }
 0x1fd   :  { %v1391_v24 = vpop.f32.mrf.mxu1  ;;  %2246 = vst [vmem:[#allocation13_spill] sm:$0xff] %v2152_v55 }
 0x1fe   :  { %v2140_v22 = vpack.c.bf16 %v1152_v20, %v1151_v19  ;;  %v1069_v26 = vadd.f32 %v1390_v17, %v731_v30  ;;  %v2154_v51 = vpop.f32.mrf.mxu0 }
 0x1ff   :  { %v1392_v49 = vpop.f32.mrf.mxu1  ;;  %2247 = vst [vmem:[#allocation14_spill] sm:$0xff] %v2154_v51 }
 0x200   :  { %v1393_v44 = vadd.f32 %v1392_v49, %v1391_v24  ;;  %v1153_v0 = vmax.f32 %v1069_v26, 0.0  ;;  %v2158_v10 = vpop.f32.mrf.mxu0 }
 0x201   :  { %v1394_v25 = vpop.f32.mrf.mxu1  ;;  %2249 = vst [vmem:[#allocation16_spill] sm:$0xff] %v2158_v10 }
 0x202   :  { %v1072_v60 = vadd.f32 %v1393_v44, %v736_v39  ;;  %v2164_v17 = vpop.f32.mrf.mxu0 }
 0x203   :  { %v1395_v61 = vpop.f32.mrf.mxu1  ;;  %2250 = vst [vmem:[#allocation17_spill] sm:$0xff] %v2164_v17 }
 0x204   :  { %v1154_v32 = vmax.f32 %v1072_v60, 0.0  ;;  %v1396_v18 = vadd.f32 %v1395_v61, %v1394_v25  ;;  %v2172_v60 = vpop.f32.mrf.mxu0 }
 0x205   :  { %v1397_v54 = vpop.f32.mrf.mxu1 }
 0x206   :  { %v2150_v43 = vpack.c.bf16 %v1154_v32, %v1153_v0  ;;  %v1077_v30 = vadd.f32 %v1396_v18, %v741_v57  ;;  %v2174_v0 = vpop.f32.mrf.mxu0 }
 0x207   :  { %v1398_v4 = vpop.f32.mrf.mxu1 }
 0x208   :  { %v1399_v47 = vadd.f32 %v1398_v4, %v1397_v54  ;;  %v1155_v50 = vmax.f32 %v1077_v30, 0.0  ;;  %v2176_v18 = vpop.f32.mrf.mxu0 }
 0x209   :  { %v1400_v46 = vpop.f32.mrf.mxu1 }
 0x20a   :  { %v1080_v39 = vadd.f32 %v1399_v47, %v746_v45  ;;  %v2178_v4 = vpop.f32.mrf.mxu0 }
 0x20b   :  { %v1401_v40 = vpop.f32.mrf.mxu1 }
 0x20c   :  { %v1156_v16 = vmax.f32 %v1080_v39, 0.0  ;;  %v1402_v21 = vadd.f32 %v1401_v40, %v1400_v46  ;;  %v1364_v45 = vpop.f32.mrf.mxu0 }
 0x20d   :  { %v1403_v52 = vpop.f32.mrf.mxu1 }
 0x20e   :  { %v2156_v7 = vpack.c.bf16 %v1156_v16, %v1155_v50  ;;  %v1085_v11 = vadd.f32 %v1402_v21, %v751_v13  ;;  %v1365_v40 = vpop.f32.mrf.mxu0 }
 0x20f   :  { %v1404_v9 = vpop.f32.mrf.mxu1 }
 0x210   :  { %2248 = vst [vmem:[#allocation15_spill] sm:$0xff] %v2156_v7  ;;  %v1405_v12 = vadd.f32 %v1404_v9, %v1403_v52  ;;  %v1157_v24 = vmax.f32 %v1085_v11, 0.0  ;;  %v1367_v21 = vpop.f32.mrf.mxu0 }
 0x211   :  { %v2160_v23 = vpop.f32.mrf.mxu1 }
 0x212   :  { %v1088_v19 = vadd.f32 %v1405_v12, %v756_v48  ;;  %v1368_v11 = vpop.f32.mrf.mxu0 }
 0x213   :  { %v2162_v20 = vpop.f32.mrf.mxu1 }
 0x214   :  { %v1158_v49 = vmax.f32 %v1088_v19, 0.0 }
 0x215   :  { %v2166_v26 = vpop.f32.mrf.mxu1 }
 0x216   :  { %v2168_v44 = vpack.c.bf16 %v1158_v49, %v1157_v24  ;;  %v1370_v24 = vpop.f32.mrf.mxu0 }
 0x217   :  { %v2170_v25 = vpop.f32.mrf.mxu1 }
 0x218   :  { %2251 = vst [vmem:[#allocation18_spill] sm:$0xff] %v2168_v44  ;;  %v1371_v7 = vpop.f32.mrf.mxu0 }
 0x219   :  { %v1412_v61 = vpop.f32.mrf.mxu1 }
 0x21a   :  { %v1373_v63 = vpop.f32.mrf.mxu0 }
 0x21b   :  { %v1413_v13 = vpop.f32.mrf.mxu1 }
 0x21c   :  { %v1374_v5 = vpop.f32.mrf.mxu0 }
 0x21d   :  { %v1415_v32 = vpop.f32.mrf.mxu1 }
 0x21f   :  { %v1416_v48 = vpop.f32.mrf.mxu1 }
 0x221   :  { %v1418_v54 = vpop.f32.mrf.mxu1 }
 0x223   :  { %v1419_v57 = vpop.f32.mrf.mxu1 }
 0x225   :  { %v1421_v30 = vpop.f32.mrf.mxu1 }
 0x227   :  { %v1422_v47 = vpop.f32.mrf.mxu1 }
 0x228   :  { %v1423_v42 = vadd.f32 %v1422_v47, %v1421_v30 }
 0x229   :  { %v1424_v46 = vpop.f32.mrf.mxu1 }
 0x22b   :  { %v1425_v39 = vpop.f32.mrf.mxu1 }
 0x22c   :  { %v1426_v53 = vadd.f32 %v1425_v39, %v1424_v46  ;;  %v2260_v46 = vld [vmem:[#allocation9_spill] sm:$0xff]  ;;  %v2261_v39 = vld [vmem:[#allocation12_spill] sm:$0xff] }
 0x22d   :  { %v1427_v50 = vpop.f32.mrf.mxu1 }
 0x22f   :  { %v1428_v16 = vpop.f32.mrf.mxu1 }
 0x230   :  { %v1429_v62 = vadd.f32 %v1428_v16, %v1427_v50  ;;  %v1117_v50 = vadd.f32 %v1426_v53, %v2099_v31 }
 0x231   :  { %v1430_v52 = vpop.f32.mrf.mxu1 }
 0x233   :  { %v1431_v9 = vpop.f32.mrf.mxu1 }
 0x234   :  { %v1432_v8 = vadd.f32 %v1431_v9, %v1430_v52  ;;  %v1420_v9 = vadd.f32 %v1419_v57, %v1418_v54 }
 0x235   :  { %v1433_v12 = vpop.f32.mrf.mxu1 }
 0x236   :  { %v1125_v17 = vadd.f32 %v1432_v8, %v2095_v58  ;;  %v1414_v8 = vadd.f32 %v1413_v13, %v1412_v61  ;;  %v2254_v61 = vld [vmem:[#allocation16_spill] sm:$0xff]  ;;  %v2255_v13 = vld [vmem:[#allocation17_spill] sm:$0xff] }
 0x237   :  { %v1434_v19 = vpop.f32.mrf.mxu1 }
 0x238   :  { %v1435_v44 = vadd.f32 %v1434_v19, %v1433_v12  ;;  %v1120_v12 = vadd.f32 %v1429_v62, %v2101_v14  ;;  %v1167_v16 = vmax.f32 %v1125_v17, 0.0  ;;  %v1109_v14 = vadd.f32 %v1420_v9, %v2103_v59  ;;  %v2265_v9 = vld [vmem:[#allocation10_spill] sm:$0xff] }
 0x239   :  { %v1436_v49 = vpop.f32.mrf.mxu1  ;;  %v1369_v62 = vadd.f32 %v1368_v11, %v1367_v21  ;;  %v1408_v59 = vadd.f32 %v2162_v20, %v2160_v23  ;;  %v2252_v20 = vld [vmem:[#allocation5_spill] sm:$0xff]  ;;  %v2262_v21 = vld [vmem:[#allocation11_spill] sm:$0xff] }
 0x23a   :  { %v1128_v2 = vadd.f32 %v1435_v44, %v2097_v33  ;;  %v1375_v44 = vadd.f32 %v1374_v5, %v1373_v63  ;;  %v1411_v5 = vadd.f32 %v2170_v25, %v2166_v26 }
 0x23b   :  { %v1437_v56 = vpop.f32.mrf.mxu1 }
 0x23c   :  { %v1438_v28 = vadd.f32 %v1437_v56, %v1436_v49  ;;  %v1168_v56 = vmax.f32 %v1128_v2, 0.0  ;;  %v1165_v2 = vmax.f32 %v1117_v50, 0.0  ;;  %v1048_v31 = vadd.f32 %v1375_v44, %v2109_v41 }
 0x23d   :  { %v1439_v15 = vpop.f32.mrf.mxu1  ;;  %v1363_v41 = vadd.f32 %v2178_v4, %v2176_v18  ;;  %v2257_v4 = vld [vmem:[#allocation13_spill] sm:$0xff] }
 0x23e   :  { %v1133_v51 = vadd.f32 %v1438_v28, %v2091_v29  ;;  %v1417_v29 = vadd.f32 %v1416_v48, %v1415_v32  ;;  %v1166_v28 = vmax.f32 %v1120_v12, 0.0  ;;  %v1186_v58 = vpack.c.bf16 %v1168_v56, %v1167_v16  ;;  %v2256_v32 = vld [vmem:[#allocation6_spill] sm:$0xff]  ;;  %v2263_v56 = vld [vmem:[#allocation7_spill] sm:$0xff] }
 0x23f   :  { %v1440_v27 = vpop.f32.mrf.mxu1  ;;  %v1032_v48 = vadd.f32 %v1363_v41, %v2256_v32 }
 0x240   :  { %v1441_v55 = vadd.f32 %v1440_v27, %v1439_v15  ;;  %v1169_v19 = vmax.f32 %v1133_v51, 0.0  ;;  %v1112_v15 = vadd.f32 %v1423_v42, %v2105_v1  ;;  %v1104_v53 = vadd.f32 %v1417_v29, %v2118_v34 }
 0x241   :  { %v1185_v42 = vpack.c.bf16 %v1166_v28, %v1165_v2  ;;  %v1366_v27 = vadd.f32 %v1365_v40, %v1364_v45  ;;  %v1040_v51 = vadd.f32 %v1369_v62, %v2124_v3  ;;  %v1148_v34 = vmax.f32 %v1048_v31, 0.0  ;;  %v661_v28 = vpop.permute.xlu0 %660  ;;  %v2267_v31 = vld [vmem:[#allocation15_spill] sm:$0xff] }
 0x242   :  { %v1136_v10 = vadd.f32 %v1441_v55, %v2093_v38  ;;  %v1372_v38 = vadd.f32 %v1371_v7, %v1370_v24  ;;  %v1164_v1 = vmax.f32 %v1112_v15, 0.0  ;;  %v1163_v55 = vmax.f32 %v1109_v14, 0.0 }
 0x243   :  { %v1096_v7 = vadd.f32 %v1411_v5, %v2128_v6  ;;  %v1357_v3 = vadd.f32 %v2255_v13, %v2254_v61  ;;  %v1146_v6 = vmax.f32 %v1040_v51, 0.0  ;;  %v1351_v40 = vadd.f32 %v2261_v39, %v2260_v46 }
 0x244   :  { %v1170_v52 = vmax.f32 %v1136_v10, 0.0  ;;  %v1045_v63 = vadd.f32 %v1372_v38, %v2107_v35  ;;  %v1162_v10 = vmax.f32 %v1104_v53, 0.0  ;;  %v1184_v17 = vpack.c.bf16 %v1164_v1, %v1163_v55  ;;  %v2268_v53 = vld [vmem:[#allocation2_spill] sm:$0xff] }
 0x245   :  { %v1360_v35 = vadd.f32 %v2174_v0, %v2172_v60  ;;  %v1160_v54 = vmax.f32 %v1096_v7, 0.0  ;;  %v2258_v60 = vld [vmem:[#allocation14_spill] sm:$0xff]  ;;  %v1024_v11 = vadd.f32 %v1357_v3, %v2262_v21  ;;  %v1144_v24 = vmax.f32 %v1032_v48, 0.0 }
 0x246   :  { %v1187_v33 = vpack.c.bf16 %v1170_v52, %v1169_v19  ;;  %v1147_v23 = vmax.f32 %v1045_v63, 0.0  ;;  %v1354_v0 = vadd.f32 %v2258_v60, %v2257_v4  ;;  %v2264_v19 = vld [vmem:[#allocation8_spill] sm:$0xff]  ;;  %v1311_v1 = vcombine.low %v2268_v53, %v2268_v53 }
 0x247   :  { %v1348_v52 = vadd.f32 %v2264_v19, %v2263_v56  ;;  %v1142_v29 = vmax.f32 %v1024_v11, 0.0 }
 0x248   :  { %1442 = vmatprep.subr.bf16.mxu0 %v1187_v33  ;;  %v1176_v18 = vpack.c.bf16 %v1148_v34, %v1147_v23  ;;  %v1021_v50 = vadd.f32 %v1354_v0, %v2265_v9  ;;  %v666_v33 = vpop.permute.xlu1 %665 }
 0x249   :  { %1443 = vmatpush3.bf16.msra.mxu0 %v2150_v43  ;;  %v1101_v43 = vadd.f32 %v1414_v8, %v2111_v37  ;;  %v2253_v37 = vld [vmem:[#allocation3_spill] sm:$0xff]  ;;  %v1016_v44 = vadd.f32 %v1351_v40, %v666_v33  ;;  %v2266_v8 = vld [vmem:[#allocation18_spill] sm:$0xff] }
 0x24a   :  { %1444 = vmatprep.subr.bf16.mxu0 %v1186_v58  ;;  %v1093_v26 = vadd.f32 %v1408_v59, %v2253_v37  ;;  %v1013_v58 = vadd.f32 %v1348_v52, %v661_v28  ;;  %v1141_v38 = vmax.f32 %v1021_v50, 0.0  ;;  %v1192_v59 = vpop.permute.xlu0 %1191 }
 0x24b   :  { %v1161_v25 = vmax.f32 %v1101_v43, 0.0  ;;  %v1140_v14 = vmax.f32 %v1016_v44, 0.0 }
 0x24c   :  { %v1159_v45 = vmax.f32 %v1093_v26, 0.0  ;;  %v1173_v2 = vpack.c.bf16 %v1142_v29, %v1141_v38  ;;  %v1139_v62 = vmax.f32 %v1013_v58, 0.0 }
 0x24d   :  { %1445 = vmatpush3.bf16.msra.mxu0 %v2140_v22  ;;  %v1037_v22 = vadd.f32 %v1366_v27, %v2122_v36  ;;  %v1183_v57 = vpack.c.bf16 %v1162_v10, %v1161_v25  ;;  %v2259_v36 = vld [vmem:[#allocation4_spill] sm:$0xff] }
 0x24e   :  { %1446 = vmatprep.subr.bf16.mxu0 %v1185_v42  ;;  %v1029_v30 = vadd.f32 %v1360_v35, %v2259_v36  ;;  %v1182_v12 = vpack.c.bf16 %v1160_v54, %v1159_v45  ;;  %v1172_v5 = vpack.c.bf16 %v1140_v14, %v1139_v62 }
 0x24f   :  { %v1145_v47 = vmax.f32 %v1037_v22, 0.0 }
 0x250   :  { %v1143_v16 = vmax.f32 %v1029_v30, 0.0 }
 0x251   :  { %1447 = vmatpush3.bf16.msra.mxu0 %v2252_v20  ;;  %v1175_v49 = vpack.c.bf16 %v1146_v6, %v1145_v47 }
 0x252   :  { %1448 = vmatprep.subr.bf16.mxu0 %v1184_v17  ;;  %v1174_v15 = vpack.c.bf16 %v1144_v24, %v1143_v16 }
 0x255   :  { %1449 = vmatpush3.bf16.msra.mxu0 %v1176_v18 }
 0x256   :  { %1450 = vmatprep.subr.bf16.mxu0 %v1183_v57 }
 0x259   :  { %1451 = vmatpush3.bf16.msra.mxu0 %v1175_v49 }
 0x25a   :  { %1452 = vmatprep.subr.bf16.mxu0 %v1182_v12 }
 0x25d   :  { %1453 = vmatpush3.bf16.msra.mxu0 %v1174_v15 }
 0x25e   :  { %1454 = vmatprep.subr.bf16.mxu0 %v2266_v8 }
 0x261   :  { %1455 = vmatpush3.bf16.msra.mxu0 %v1173_v2 }
 0x262   :  { %1456 = vmatprep.subr.bf16.mxu0 %v2267_v31 }
 0x265   :  { %1457 = vmatpush3.bf16.msra.mxu0 %v1172_v5 }
 0x268   :  { %1234 = vmatmul.mubr.bf16.vlgmr.msra.gmra.mxu0 %v1311_v1 }
 0x328   :  { %v1458_v42 = vpop.f32.mrf.mxu0 }
 0x32a   :  { %v1459_v27 = vpop.f32.mrf.mxu0 }
 0x32b   :  { %v1460_v63 = vadd.f32 %v1459_v27, %v1458_v42 }
 0x32c   :  { %v1461_v43 = vpop.f32.mrf.mxu0 }
 0x32d   :  { %v1236_v55 = vadd.f32 %v1460_v63, %v1192_v59 }
 0x32e   :  { %v1462_v41 = vpop.f32.mrf.mxu0 }
 0x32f   :  { %1584 = vtanh.f32 %v1236_v55 }
 0x33c   :  { %v1585_v51 = vpop.eup %1584 }
 0x33d   :  { %1242 = vst [vmem:[%s2233_s7] sm:$0xff] %v1585_v51 }

</bundles_post_ra>
